<compile_context>
chip_gen: v6e
topology: v6e:2x2x1
jax: 0.10.0
libtpu: 0.0.40
codegen_flags: <defaults>
</compile_context>

<pallas_src>
import jax
import jax.numpy as jnp
from jax.experimental import pallas as pl
from jax.experimental.pallas import tpu as pltpu

_LANE = 128


def _add_kernel(w_ref, x_ref, o_ref):
    # Pure VPU elementwise add. x_ref block may be (tn, tm), (1, tm), (tn, 1)
    # or (1, 1); jnp broadcasting inside the tile handles every case, and the
    # dtype cast happens on the VPU underneath the DMA.
    o_ref[...] = w_ref[...].astype(o_ref.dtype) + x_ref[...].astype(o_ref.dtype)


def _round_down(v, m):
    return (v // m) * m


def _vmem_budget_and_limit():
    """Generation-aware VMEM budget (2 pipeline buffers total) + scoped limit."""
    try:
        cap = int(pltpu.get_tpu_info().vmem_capacity_bytes)
    except Exception:  # query unavailable (e.g. interpret mode) -> be conservative
        cap = 64 * 1024 * 1024
    if cap <= 64 * 1024 * 1024:
        budget = 40 * 1024 * 1024      # v7x-class: 64 MiB physical per TC
    else:
        budget = 80 * 1024 * 1024      # v5e / v6e: 128 MiB physical
    limit = max(budget, min(cap - 8 * 1024 * 1024, budget + 16 * 1024 * 1024))
    return budget, int(limit)


def _sublane_multiple(*dtypes):
    """Packed-sublane row multiple of the narrowest dtype in flight."""
    sub = 8
    for dt in dtypes:
        isz = jnp.dtype(dt).itemsize
        if isz == 2:
            sub = max(sub, 16)
        elif isz <= 1:
            sub = max(sub, 32)
    return sub


def _choose_tiles(N, M, w_isz, x_isz, o_isz, x_mode, sub, budget):
    """Pick (tile_n, tile_m) so double-buffered blocks fit the VMEM budget."""
    per_step = max(budget // 2, 1)  # 2 pipeline buffers per array

    def linear_terms(tile_n):
        # bytes(tile_n, tile_m) = A * tile_m + B
        A = tile_n * (w_isz + o_isz)
        B = 0
        if x_mode == "full":
            A += tile_n * x_isz
        elif x_mode == "row":
            A += x_isz                 # (1, tile_m) block
        elif x_mode == "col":
            B += tile_n * x_isz        # (tile_n, 1) block
        else:                          # scalar
            B += x_isz
        return A, B

    def max_rows(tile_m):
        per_row = tile_m * (w_isz + o_isz)
        fixed = 0
        if x_mode == "full":
            per_row += tile_m * x_isz
        elif x_mode == "row":
            fixed += tile_m * x_isz
        elif x_mode == "col":
            per_row += x_isz
        else:
            fixed += x_isz
        return max(0, (per_step - fixed) // max(per_row, 1))

    tile_m = M
    rows = max_rows(M)
    if rows >= N:
        tile_n = N
    elif rows >= sub:
        tile_n = _round_down(rows, sub)
    elif (M % _LANE == 0) and (M > _LANE):
        # Even `sub` full-M rows overflow the budget: tile the lane axis too.
        tile_n = min(N, sub)
        A, B = linear_terms(tile_n)
        tm = (per_step - B) // max(A, 1)
        tile_m = int(min(M, max(_LANE, _round_down(tm, _LANE))))
    else:
        # M cannot be lane-tiled cleanly; take `sub` rows and rely on the
        # vmem_limit headroom (only reachable for extremely wide ragged rows).
        tile_n = min(N, sub)

    # v7x has 2 TensorCores: make sure a non-trivial problem has >=2 grid
    # steps so the "parallel" axes can shard across them (the extra grid step
    # is ~0.35us on single-core chips, negligible at this size).
    out_bytes = N * M * o_isz
    if tile_n >= N and tile_m >= M and N >= 2 * sub and out_bytes >= (4 << 20):
        half = -(-N // 2)
        tile_n = min(tile_n, ((half + sub - 1) // sub) * sub)

    return int(max(tile_n, 1)), int(max(tile_m, 1))


def simple_forward(weight: jax.Array, x) -> jax.Array:
    """weight: [N, M]; x: [N, M], (M,)/(1,M), (N,1), or scalar (torch broadcast)."""
    weight = jnp.asarray(weight)
    x = jnp.asarray(x)
    N, M = weight.shape
    out_dtype = jnp.promote_types(weight.dtype, x.dtype)

    # ---- classify PyTorch-style broadcast pattern of `x` --------------------
    if x.shape == (N, M):
        x_mode = "full"
    elif x.shape in ((M,), (1, M)):
        x_mode = "row"
        x = x.reshape(1, M)
    elif x.shape == (N, 1):
        x_mode = "col"
    elif x.shape in ((), (1,), (1, 1)):
        x_mode = "scalar"
        x = x.reshape(1, 1)
    else:
        # TODO(synk): other broadcast patterns fall back to a wrapper-side
        # materialization (extra HBM traffic) instead of in-kernel broadcast.
        x = jnp.broadcast_to(x, (N, M))
        x_mode = "full"

    x_bytes_actual = x.size * jnp.dtype(x.dtype).itemsize

    # ---- lane-dense re-layout for awkward M (full-x case only) --------------
    # M < 128 or M % 128 != 0 would lower to masked vst.msk stores; flattening
    # the contiguous (N, M) slab to lane-dense rows is pure layout plumbing.
    Nk, Mk = N, M
    wk, xk = weight, x
    if x_mode == "full" and (M < _LANE or M % _LANE != 0) and (N * M) % _LANE == 0:
        total = N * M
        L = _LANE
        while total % (2 * L) == 0 and 2 * L <= 8192:
            L *= 2
        Nk, Mk = total // L, L
        wk = weight.reshape(Nk, Mk)
        xk = x.reshape(Nk, Mk)

    w_isz = jnp.dtype(weight.dtype).itemsize
    x_isz = jnp.dtype(x.dtype).itemsize
    o_isz = jnp.dtype(out_dtype).itemsize
    sub = _sublane_multiple(weight.dtype, x.dtype, out_dtype)
    budget, vmem_limit = _vmem_budget_and_limit()
    tile_n, tile_m = _choose_tiles(Nk, Mk, w_isz, x_isz, o_isz, x_mode, sub, budget)

    grid = (pl.cdiv(Nk, tile_n), pl.cdiv(Mk, tile_m))

    w_spec = pl.BlockSpec((tile_n, tile_m), lambda i, j: (i, j))
    o_spec = pl.BlockSpec((tile_n, tile_m), lambda i, j: (i, j))
    if x_mode == "full":
        x_spec = pl.BlockSpec((tile_n, tile_m), lambda i, j: (i, j))
    elif x_mode == "row":
        x_spec = pl.BlockSpec((1, tile_m), lambda i, j: (0, j))
    elif x_mode == "col":
        x_spec = pl.BlockSpec((tile_n, 1), lambda i, j: (i, 0))
    else:  # scalar
        x_spec = pl.BlockSpec((1, 1), lambda i, j: (0, 0))

    cost = pl.CostEstimate(
        flops=N * M,
        transcendentals=0,
        bytes_accessed=N * M * w_isz + x_bytes_actual + N * M * o_isz,
    )

    out = pl.pallas_call(
        _add_kernel,
        out_shape=jax.ShapeDtypeStruct((Nk, Mk), out_dtype),
        grid_spec=pl.GridSpec(grid=grid, in_specs=[w_spec, x_spec], out_specs=o_spec),
        compiler_params=pltpu.CompilerParams(
            dimension_semantics=("parallel", "parallel"),
            vmem_limit_bytes=vmem_limit,
        ),
        cost_estimate=cost,
    )(wk, xk)

    return out.reshape(N, M)


if __name__ == "__main__":
    # Module: Simple(N, M) with weight ~ torch.rand(N, M). Small, tile-aligned.
    N, M = 8, 128

    key = jax.random.PRNGKey(0)
    kw, kx, kr, kc, k2 = jax.random.split(key, 5)
    weight = jax.random.uniform(kw, (N, M), dtype=jnp.float32)  # torch.rand-like
    x = jax.random.normal(kx, (N, M), dtype=jnp.float32)

    # Case 1: same-shape add (canonical forward).
    out = simple_forward(weight, x)
    jax.block_until_ready(out)
    assert out.shape == (N, M) and out.dtype == jnp.float32
    assert jnp.allclose(out, weight + x, atol=1e-6), "mismatch (full x)"

    # Case 2: row-broadcast input (weight + (M,) vector), handled in-kernel.
    x_row = jax.random.normal(kr, (M,), dtype=jnp.float32)
    out_r = simple_forward(weight, x_row)
    jax.block_until_ready(out_r)
    assert jnp.allclose(out_r, weight + x_row, atol=1e-6), "mismatch (row x)"

    # Case 3: column-broadcast input (N, 1), handled in-kernel.
    x_col = jax.random.normal(kc, (N, 1), dtype=jnp.float32)
    out_c = simple_forward(weight, x_col)
    jax.block_until_ready(out_c)
    assert jnp.allclose(out_c, weight + x_col, atol=1e-6), "mismatch (col x)"

    # Case 4: scalar input, handled in-kernel.
    out_s = simple_forward(weight, jnp.float32(0.5))
    jax.block_until_ready(out_s)
    assert jnp.allclose(out_s, weight + 0.5, atol=1e-6), "mismatch (scalar x)"

    # Case 5: non-lane-aligned M -> lane-dense re-layout path.
    N2, M2 = 16, 96
    w2 = jax.random.uniform(k2, (N2, M2), dtype=jnp.float32)
    x2 = jax.random.normal(kx, (N2, M2), dtype=jnp.float32)
    out2 = simple_forward(w2, x2)
    jax.block_until_ready(out2)
    assert jnp.allclose(out2, w2 + x2, atol=1e-6), "mismatch (relayout x)"

    print("KERNEL_OK")
</pallas_src>

<mosaic_0001>
module attributes {stable_mosaic.version = 11 : i64} {
  func.func @_add_kernel(%arg0: i32, %arg1: i32, %arg2: memref<8x128xf32, #tpu.memory_space<vmem>>, %arg3: memref<8x128xf32, #tpu.memory_space<vmem>>, %arg4: memref<8x128xf32, #tpu.memory_space<vmem>>) attributes {dimension_semantics = [#tpu.dimension_semantics<parallel>, #tpu.dimension_semantics<parallel>], iteration_bounds = array<i64: 1, 1>, scalar_prefetch = 0 : i64, scratch_operands = 0 : i64, tpu.core_type = #tpu.core_type<tc>, window_params = [{transform_indices = @transform_0, window_bounds = array<i64: 8, 128>}, {transform_indices = @transform_1, window_bounds = array<i64: 8, 128>}, {transform_indices = @transform_2, window_bounds = array<i64: 8, 128>}]} {
    %c0 = arith.constant 0 : index
    %c0_0 = arith.constant 0 : index
    %0 = vector.load %arg2[%c0, %c0_0] : memref<8x128xf32, #tpu.memory_space<vmem>>, vector<8x128xf32>
    %c0_1 = arith.constant 0 : index
    %c0_2 = arith.constant 0 : index
    %1 = vector.load %arg3[%c0_1, %c0_2] : memref<8x128xf32, #tpu.memory_space<vmem>>, vector<8x128xf32>
    %2 = arith.addf %0, %1 : vector<8x128xf32>
    %c0_3 = arith.constant 0 : index
    %c0_4 = arith.constant 0 : index
    %3 = vector.load %arg4[%c0_3, %c0_4] : memref<8x128xf32, #tpu.memory_space<vmem>>, vector<8x128xf32>
    tpu.vector_store %arg4[%c0_3, %c0_4], %2 {strides = array<i32>} : memref<8x128xf32, #tpu.memory_space<vmem>>, vector<8x128xf32>,
    return
  }
  func.func @transform_0(%arg0: i32, %arg1: i32) -> (i32, i32) {
    %c0_i32 = arith.constant 0 : i32
    return %arg0, %arg1 : i32, i32
  }
  func.func @transform_1(%arg0: i32, %arg1: i32) -> (i32, i32) {
    %c0_i32 = arith.constant 0 : i32
    return %arg0, %arg1 : i32, i32
  }
  func.func @transform_2(%arg0: i32, %arg1: i32) -> (i32, i32) {
    %c0_i32 = arith.constant 0 : i32
    return %arg0, %arg1 : i32, i32
  }
}

</mosaic_0001>

<bundles_post_ra>
// kernel: tpu_custom_call.1
= control target key start
LH: loop header
LB: loop body
LE: loop exit
PB: predicated region body
PF: predicated region fallthrough
CT: control target
= control target key end

     0   :  { %7 = vsyncpa [#allocation3], 0  ;;  %s152_s0 = inlined_call_operand.hbm [shape: f32[8,128], index: 0, kind: input, shape index: {}]   ;;  %s153_s1 = inlined_call_operand.hbm [shape: f32[8,128], index: 1, kind: input, shape index: {}]   ;;  %s154_s2 = inlined_call_operand.hbm [shape: f32[8,128], index: 2, kind: output, shape index: {}]  }
   0x1   :  { %8 = vsyncpa [#allocation6], 0 }
   0x2   :  { %9 = vsyncpa [#allocation4], 0  ;;  %s125_s9 = smov [#allocation2]   ;;  %s126_s11 = smov [#allocation5]  }
   0x3   :  { %s16_s10 = sshll.u32 %s125_s9, 4  ;;  %s26_s12 = sshll.u32 %s126_s11, 4  ;;  %s17_s10 = int_to_ptr.vmem [resolvable:$true] %s16_s10  ;;  %s27_s12 = int_to_ptr.vmem [resolvable:$true] %s26_s12 }
   0x4   :  { %s67_s13 = scalar_lea.vmem %s17_s10, 128  ;;  %p72_p1 = scmp.lt.s32.totalorder %s17_s10, %s17_s10 }
   0x5   :  { %p68_p0 = scmp.ne.s32.totalorder %s17_s10, %s67_s13  ;;  %p73_p2 = scmp.lt.s32.totalorder %s67_s13, %s67_s13 }
   0x7   :  { %p74_p3 = por %p73_p2, %p72_p1 }
   0x9   :  { %p75_p4 = pnand %p74_p3, %p68_p0 }
   0xb   :  { %78 = shalt.err (!%p75_p4)
}
   0xc   :  { %19 = dma.hbm_to_vmem [thread:$0]  %s152_s0, 128, %s17_s10, [#allocation3]  }
   0xd   :  { %s87_s16 = scalar_lea.vmem %s27_s12, 128  ;;  %p92_p6 = scmp.lt.s32.totalorder %s27_s12, %s27_s12 }
   0xe   :  { %p88_p5 = scmp.ne.s32.totalorder %s27_s12, %s87_s16  ;;  %p93_p7 = scmp.lt.s32.totalorder %s87_s16, %s87_s16 }
  0x10   :  { %p94_p8 = por %p93_p7, %p92_p6 }
  0x12   :  { %p95_p9 = pnand %p94_p8, %p88_p5 }
  0x14   :  { %98 = shalt.err (!%p95_p9)
}
  0x15   :  { %29 = dma.hbm_to_vmem [thread:$0]  %s153_s1, 128, %s27_s12, [#allocation6]  }
  0x16   :  { %119 = dma.done.wait [#allocation3], 128  }
  0x17   :  { %120 = vsyncadd [#allocation3], 4294967168 }
  0x18   :  { %121 = dma.done.wait [#allocation6], 128  }
  0x19   :  { %122 = vsyncadd [#allocation6], 4294967168  ;;  %s127_s19 = smov [#allocation7]   ;;  %v36_v0 = vld [vmem:[#allocation2] sm:$0xff]  ;;  %v37_v1 = vld [vmem:[#allocation5] sm:$0xff] }
  0x1a   :  { %s46_s20 = sshll.u32 %s127_s19, 4  ;;  %v38_v2 = vadd.f32 %v37_v1, %v36_v0  ;;  %s47_s20 = int_to_ptr.vmem [resolvable:$true] %s46_s20 }
  0x1b   :  { %s99_s0 = scalar_lea.vmem %s47_s20, 128  ;;  %p104_p11 = scmp.lt.s32.totalorder %s47_s20, %s47_s20 }
  0x1c   :  { %39 = vst [vmem:[#allocation7] sm:$0xff] %v38_v2  ;;  %p100_p10 = scmp.ne.s32.totalorder %s47_s20, %s99_s0  ;;  %p105_p12 = scmp.lt.s32.totalorder %s99_s0, %s99_s0 }
  0x1e   :  { %p106_p13 = por %p105_p12, %p104_p11 }
  0x20   :  { %p107_p0 = pnand %p106_p13, %p100_p10 }
  0x22   :  { %110 = shalt.err (!%p107_p0)
}
  0x23   :  { %49 = dma.vmem_to_hbm [thread:$0]  %s47_s20, 128, %s154_s2, [#allocation4]  }
  0x24   :  { %123 = dma.done.wait [#allocation4], 128  }
  0x25   :  { %124 = vsyncadd [#allocation4], 4294967168 }
  0x26   :  { %53 = vsyncpa [#allocation3], 1 }
  0x27   :  { %54 = vsyncpa [#allocation6], 1 }
  0x28   :  { %55 = vsyncpa [#allocation4], 1 }

</bundles_post_ra>
